<compile_context>
chip_gen: v5e
topology: v5e:2x2
jax: 0.10.0
libtpu: 0.0.40
codegen_flags: <defaults>
</compile_context>

<pallas_src>
import jax
import jax.numpy as jnp
from jax.experimental import pallas as pl
from jax.experimental.pallas import tpu as pltpu


def res_unit_kernel(x_ref, w1_ref, b1_ref, w2_ref, b2_ref, o_ref):
    # x_ref : (C, T)  io_dtype          w1_ref: (P, C)  BN1-scale-folded, io_dtype
    # b1_ref: (P, 1)  f32               w2_ref: (P, P)  BN2-scale-folded, io_dtype
    # b2_ref: (P, 1)  f32               o_ref : (P, T)  io_dtype   (C == P)
    x = x_ref[...]

    # conv1 (1x1) == W1 @ x (f32 accumulation), folded BN1 bias, ReLU
    h = jnp.dot(w1_ref[...], x, preferred_element_type=jnp.float32)
    h = jnp.maximum(h + b1_ref[...], 0.0)

    # conv2 (1x1) == W2 @ h (f32 accumulation), folded BN2 bias
    o = jnp.dot(w2_ref[...], h.astype(w2_ref.dtype),
                preferred_element_type=jnp.float32)

    # bias + residual add (f32) + ReLU
    o = o + b2_ref[...] + x.astype(jnp.float32)
    o_ref[...] = jnp.maximum(o, 0.0).astype(o_ref.dtype)


def res_unit_pallas(x_nchw, w1, g1, be1, rm1, rv1, w2, g2, be2, rm2, rv2,
                    eps=1e-5, tile_hw=8192, io_dtype=jnp.float32):
    """x_nchw: (N, C, H, W). w1: (P, C), w2: (P, P) squeezed 1x1 conv weights.

    Returns (N, P, H, W) in io_dtype (no extra upcast pass).
    """
    N, C, H, W = x_nchw.shape
    P = w1.shape[0]
    assert C == P, "residual add requires in_planes == planes"

    # Fold BN (inference running stats) into per-channel scale/bias, then fold
    # the scales into the matmul weights (cheap one-time precompute).
    s1 = g1 / jnp.sqrt(rv1 + eps)
    b1 = be1 - rm1 * s1
    s2 = g2 / jnp.sqrt(rv2 + eps)
    b2 = be2 - rm2 * s2

    w1_eff = (s1[:, None] * w1).astype(io_dtype)      # (P, C)
    w2_eff = (s2[:, None] * w2).astype(io_dtype)      # (P, P)
    b1_col = b1.reshape(P, 1).astype(jnp.float32)     # sublane-broadcast bias
    b2_col = b2.reshape(P, 1).astype(jnp.float32)

    # Free view: (N, C, HW). Channels on sublane, spatial on lane inside the kernel.
    HW = H * W
    if HW <= tile_hw:
        tile_hw = HW                                   # single exact block per image
    else:
        tile_hw = max(128, (tile_hw // 128) * 128)     # lane-dense; ragged tail OK
    x3 = x_nchw.reshape(N, C, HW).astype(io_dtype)

    grid = (N, pl.cdiv(HW, tile_hw))

    # VMEM budget: double-buffered x + out tiles in io_dtype, plus the f32
    # h/o intermediates, plus resident weights/bias slack.
    itemsize = jnp.dtype(io_dtype).itemsize
    vmem_est = (2 * C * tile_hw * itemsize            # x (double-buffered)
                + 2 * P * tile_hw * itemsize          # out (double-buffered)
                + 2 * P * tile_hw * 4                 # h, o f32 intermediates
                + (1 << 20))                          # weights/bias + slack
    vmem_limit = int(min(max(vmem_est, 32 << 20), 48 << 20))  # safe on v5e/v6e/v7x

    out3 = pl.pallas_call(
        res_unit_kernel,
        out_shape=jax.ShapeDtypeStruct((N, P, HW), io_dtype),
        grid_spec=pltpu.PrefetchScalarGridSpec(
            num_scalar_prefetch=0,
            grid=grid,
            in_specs=[
                # x tile: batch dim squeezed, (C, tile_hw) lane-dense view.
                pl.BlockSpec((None, C, tile_hw), lambda n, i: (n, 0, i)),
                pl.BlockSpec((P, C), lambda n, i: (0, 0)),   # w1 (resident)
                pl.BlockSpec((P, 1), lambda n, i: (0, 0)),   # b1
                pl.BlockSpec((P, P), lambda n, i: (0, 0)),   # w2 (resident)
                pl.BlockSpec((P, 1), lambda n, i: (0, 0)),   # b2
            ],
            out_specs=pl.BlockSpec((None, P, tile_hw), lambda n, i: (n, 0, i)),
        ),
        compiler_params=pltpu.CompilerParams(
            dimension_semantics=("parallel", "parallel"),
            vmem_limit_bytes=vmem_limit,
        ),
    )(x3, w1_eff, b1_col, w2_eff, b2_col)

    # Free view back to NCHW; stays in io_dtype (no hidden upcast pass).
    return out3.reshape(N, P, H, W)


def res_unit_ref(x_nchw, w1, g1, be1, rm1, rv1, w2, g2, be2, rm2, rv2, eps=1e-5):
    """Pure-JAX reference (inference BN), for correctness check."""
    N, C, H, W = x_nchw.shape
    P = w1.shape[0]
    x_mat = jnp.transpose(x_nchw, (0, 2, 3, 1)).reshape(-1, C)
    s1 = g1 / jnp.sqrt(rv1 + eps)
    b1 = be1 - rm1 * s1
    s2 = g2 / jnp.sqrt(rv2 + eps)
    b2 = be2 - rm2 * s2
    h = jnp.maximum(x_mat @ w1.T * s1 + b1, 0.0)
    o = h @ w2.T * s2 + b2 + x_mat
    o = jnp.maximum(o, 0.0)
    return o.reshape(N, H, W, P).transpose(0, 3, 1, 2)


if __name__ == "__main__":
    key = jax.random.PRNGKey(0)
    N, C, H, W = 2, 32, 16, 16      # in_planes == planes == 32 (residual requires it)
    P = C

    ks = jax.random.split(key, 11)
    x = jax.random.normal(ks[0], (N, C, H, W), dtype=jnp.float32)

    # conv1x1 weights (out, in) — 1x1 kernel squeezed
    w1 = jax.random.normal(ks[1], (P, C), dtype=jnp.float32) * 0.1
    w2 = jax.random.normal(ks[2], (P, P), dtype=jnp.float32) * 0.1

    # BatchNorm parameters / running stats (deterministic)
    g1 = 1.0 + 0.1 * jax.random.normal(ks[3], (P,), dtype=jnp.float32)
    be1 = 0.1 * jax.random.normal(ks[4], (P,), dtype=jnp.float32)
    rm1 = 0.05 * jax.random.normal(ks[5], (P,), dtype=jnp.float32)
    rv1 = 1.0 + 0.1 * jnp.abs(jax.random.normal(ks[6], (P,), dtype=jnp.float32))

    g2 = 1.0 + 0.1 * jax.random.normal(ks[7], (P,), dtype=jnp.float32)
    be2 = 0.1 * jax.random.normal(ks[8], (P,), dtype=jnp.float32)
    rm2 = 0.05 * jax.random.normal(ks[9], (P,), dtype=jnp.float32)
    rv2 = jnp.ones((P,), dtype=jnp.float32)

    params = (w1, g1, be1, rm1, rv1, w2, g2, be2, rm2, rv2)
    ref = res_unit_ref(x, *params)

    # 1) f32 path, default big tile (clamps to HW=256 here) -> grid (2, 1), even.
    out = jax.block_until_ready(res_unit_pallas(x, *params))
    assert out.shape == (N, C, H, W)
    assert jnp.allclose(out, ref, atol=1e-4, rtol=1e-4)

    # 2) ragged last spatial block (no pad copy): H=W=20 -> HW=400 with tile_hw=128.
    x2 = jax.random.normal(ks[10], (N, C, 20, 20), dtype=jnp.float32)
    out2 = jax.block_until_ready(res_unit_pallas(x2, *params, tile_hw=128))
    ref2 = res_unit_ref(x2, *params)
    assert out2.shape == (N, C, 20, 20)
    assert jnp.allclose(out2, ref2, atol=1e-4, rtol=1e-4)

    # 3) bf16 I/O path (halves HBM traffic; f32 accumulation / residual inside).
    out_bf16 = jax.block_until_ready(
        res_unit_pallas(x, *params, io_dtype=jnp.bfloat16))
    assert out_bf16.dtype == jnp.bfloat16
    assert jnp.allclose(out_bf16.astype(jnp.float32), ref, atol=5e-2, rtol=5e-2)

    print("KERNEL_OK")
</pallas_src>

<mosaic_0001>
module attributes {stable_mosaic.version = 11 : i64} {
  func.func @res_unit_kernel(%arg0: i32, %arg1: i32, %arg2: memref<1x32x256xf32, #tpu.memory_space<vmem>>, %arg3: memref<32x32xf32, #tpu.memory_space<vmem>>, %arg4: memref<32x1xf32, #tpu.memory_space<vmem>>, %arg5: memref<32x32xf32, #tpu.memory_space<vmem>>, %arg6: memref<32x1xf32, #tpu.memory_space<vmem>>, %arg7: memref<1x32x256xf32, #tpu.memory_space<vmem>>) attributes {dimension_semantics = [#tpu.dimension_semantics<parallel>, #tpu.dimension_semantics<parallel>], iteration_bounds = array<i64: 2, 1>, scalar_prefetch = 0 : i64, scratch_operands = 0 : i64, tpu.core_type = #tpu.core_type<tc>, window_params = [{transform_indices = @transform_0, window_bounds = array<i64: 1, 32, 256>}, {pipeline_mode = #tpu.pipeline_mode<synchronous>, transform_indices = @transform_1, window_bounds = array<i64: 32, 32>}, {pipeline_mode = #tpu.pipeline_mode<synchronous>, transform_indices = @transform_2, window_bounds = array<i64: 32, 1>}, {pipeline_mode = #tpu.pipeline_mode<synchronous>, transform_indices = @transform_3, window_bounds = array<i64: 32, 32>}, {pipeline_mode = #tpu.pipeline_mode<synchronous>, transform_indices = @transform_4, window_bounds = array<i64: 32, 1>}, {transform_indices = @transform_5, window_bounds = array<i64: 1, 32, 256>}]} {
    %c0 = arith.constant 0 : index
    %c0_0 = arith.constant 0 : index
    %c0_1 = arith.constant 0 : index
    %0 = vector.load %arg2[%c0, %c0_0, %c0_1] : memref<1x32x256xf32, #tpu.memory_space<vmem>>, vector<1x32x256xf32>
    %1 = vector.shape_cast %0 : vector<1x32x256xf32> to vector<32x256xf32>
    %c0_2 = arith.constant 0 : index
    %c0_3 = arith.constant 0 : index
    %2 = vector.load %arg3[%c0_2, %c0_3] : memref<32x32xf32, #tpu.memory_space<vmem>>, vector<32x32xf32>
    %cst = arith.constant dense<0.000000e+00> : vector<32x256xf32>
    %3 = tpu.matmul %2, %1, %cst {dimension_numbers = #tpu.dot_dimension_numbers<[1], [0], [0], [1], [0, 0, 1, 1], [], []>} : vector<32x32xf32>, vector<32x256xf32>, vector<32x256xf32> -> vector<32x256xf32>
    %c0_4 = arith.constant 0 : index
    %c0_5 = arith.constant 0 : index
    %4 = vector.load %arg4[%c0_4, %c0_5] : memref<32x1xf32, #tpu.memory_space<vmem>>, vector<32x1xf32>
    %5 = vector.broadcast %4 : vector<32x1xf32> to vector<32x256xf32>
    %6 = arith.addf %3, %5 : vector<32x256xf32>
    %cst_6 = arith.constant 0.000000e+00 : f32
    %7 = vector.broadcast %cst_6 : f32 to vector<32x256xf32>
    %8 = arith.maximumf %6, %7 : vector<32x256xf32>
    %c0_7 = arith.constant 0 : index
    %c0_8 = arith.constant 0 : index
    %9 = vector.load %arg5[%c0_7, %c0_8] : memref<32x32xf32, #tpu.memory_space<vmem>>, vector<32x32xf32>
    %cst_9 = arith.constant dense<0.000000e+00> : vector<32x256xf32>
    %10 = tpu.matmul %9, %8, %cst_9 {dimension_numbers = #tpu.dot_dimension_numbers<[1], [0], [0], [1], [0, 0, 1, 1], [], []>} : vector<32x32xf32>, vector<32x256xf32>, vector<32x256xf32> -> vector<32x256xf32>
    %c0_10 = arith.constant 0 : index
    %c0_11 = arith.constant 0 : index
    %11 = vector.load %arg6[%c0_10, %c0_11] : memref<32x1xf32, #tpu.memory_space<vmem>>, vector<32x1xf32>
    %12 = vector.broadcast %11 : vector<32x1xf32> to vector<32x256xf32>
    %13 = arith.addf %10, %12 : vector<32x256xf32>
    %14 = arith.addf %13, %1 : vector<32x256xf32>
    %cst_12 = arith.constant 0.000000e+00 : f32
    %15 = vector.broadcast %cst_12 : f32 to vector<32x256xf32>
    %16 = arith.maximumf %14, %15 : vector<32x256xf32>
    %c0_13 = arith.constant 0 : index
    %c0_14 = arith.constant 0 : index
    %c0_15 = arith.constant 0 : index
    %17 = vector.load %arg7[%c0_13, %c0_14, %c0_15] : memref<1x32x256xf32, #tpu.memory_space<vmem>>, vector<1x32x256xf32>
    %18 = vector.shape_cast %17 : vector<1x32x256xf32> to vector<32x256xf32>
    %19 = vector.shape_cast %16 : vector<32x256xf32> to vector<1x32x256xf32>
    tpu.vector_store %arg7[%c0_13, %c0_14, %c0_15], %19 {strides = array<i32>} : memref<1x32x256xf32, #tpu.memory_space<vmem>>, vector<1x32x256xf32>,
    return
  }
  func.func @transform_0(%arg0: i32, %arg1: i32) -> (i32, i32, i32) {
    %c0_i32 = arith.constant 0 : i32
    %c0_i32_0 = arith.constant 0 : i32
    return %arg0, %c0_i32, %arg1 : i32, i32, i32
  }
  func.func @transform_1(%arg0: i32, %arg1: i32) -> (i32, i32) {
    %c0_i32 = arith.constant 0 : i32
    %c0_i32_0 = arith.constant 0 : i32
    %c0_i32_1 = arith.constant 0 : i32
    return %c0_i32, %c0_i32_0 : i32, i32
  }
  func.func @transform_2(%arg0: i32, %arg1: i32) -> (i32, i32) {
    %c0_i32 = arith.constant 0 : i32
    %c0_i32_0 = arith.constant 0 : i32
    %c0_i32_1 = arith.constant 0 : i32
    return %c0_i32, %c0_i32_0 : i32, i32
  }
  func.func @transform_3(%arg0: i32, %arg1: i32) -> (i32, i32) {
    %c0_i32 = arith.constant 0 : i32
    %c0_i32_0 = arith.constant 0 : i32
    %c0_i32_1 = arith.constant 0 : i32
    return %c0_i32, %c0_i32_0 : i32, i32
  }
  func.func @transform_4(%arg0: i32, %arg1: i32) -> (i32, i32) {
    %c0_i32 = arith.constant 0 : i32
    %c0_i32_0 = arith.constant 0 : i32
    %c0_i32_1 = arith.constant 0 : i32
    return %c0_i32, %c0_i32_0 : i32, i32
  }
  func.func @transform_5(%arg0: i32, %arg1: i32) -> (i32, i32, i32) {
    %c0_i32 = arith.constant 0 : i32
    %c0_i32_0 = arith.constant 0 : i32
    return %arg0, %c0_i32, %arg1 : i32, i32, i32
  }
}

</mosaic_0001>

<bundles_post_ra>
// kernel: tpu_custom_call.1
= control target key start
LH: loop header
LB: loop body
LE: loop exit
PB: predicated region body
PF: predicated region fallthrough
CT: control target
= control target key end

     0   :  { %10 = vsyncpa [#allocation3], 0  ;;  %s1090_s0 = inlined_call_operand.hbm [shape: f32[2,32,256], index: 0, kind: input, shape index: {}]   ;;  %s1091_s1 = inlined_call_operand.vmem [shape: f32[32,32], index: 1, kind: input, shape index: {}]   ;;  %s1092_s2 = inlined_call_operand.vmem [shape: f32[32,1], index: 2, kind: input, shape index: {}]   ;;  %s1093_s3 = inlined_call_operand.vmem [shape: f32[32,32], index: 3, kind: input, shape index: {}]   ;;  %s1094_s4 = inlined_call_operand.vmem [shape: f32[32,1], index: 4, kind: input, shape index: {}]   ;;  %s1095_s5 = inlined_call_operand.hbm [shape: f32[2,32,256], index: 5, kind: output, shape index: {}]  }
   0x1   :  { %12 = vsyncpa [#allocation3 + $0x1], 0 }
   0x2   :  { %13 = vsyncpa [#allocation4], 0 }
   0x3   :  { %15 = vsyncpa [#allocation4 + $0x1], 0  ;;  %s859_s18 = smov 0   ;;  %s861_s19 = smov 0  }
   0x4   :  { %s863_s20 = smov 0   ;;  %s865_s21 = smov 0  }
   0x5   :  { %s867_s22 = smov 0   ;;  %s869_s23 = smov 0  }
   0x6 LB: > { %s607_s24 = sadd.s32 4294967295, %s822_s23   ;;  %s608_s25 = sadd.s32 4294967294, %s822_s23   ;;  %s822_s23 = sphi %s869_s23, %s21_s23   ;;  %s818_s22 = sphi %s867_s22, %s1104_s22   ;;  %s814_s21 = sphi %s865_s21, %s1103_s21   ;;  %s810_s20 = sphi %s863_s20, %s1102_s20   ;;  %s806_s19 = sphi %s861_s19, %s1101_s19   ;;  %s802_s18 = sphi %s859_s18, %s1100_s18  }
   0x7   : > { %s33_s26 = sadd.s32 1, %s818_s22  ;;  %s42_s27 = sadd.s32 1, %s810_s20 }
   0x8   : > { %p35_p0 = scmp.ge.s32.totalorder %s33_s26, 2  ;;  %p49_p1 = scmp.ne.s32.totalorder %s810_s20, %s806_s19 }
   0x9   : > { %p50_p2 = scmp.eq.s32.totalorder %s822_s23, 0  ;;  %p55_p3 = scmp.ne.s32.totalorder %s806_s19, %s802_s18 }
   0xa   : > { %s1106_s26 = smov (%p35_p0, %s33_s26), 0  ;;  %p56_p5 = scmp.eq.s32.totalorder %s607_s24, 0 }
   0xb   : > { %p900_p4 = por %p50_p2, %p49_p1  ;;  %s37_s29 = ssub.s32 %s818_s22, %s1106_s26 }
   0xc   : > { %p165_p6 = scmp.eq.s32.totalorder %s607_s24, 1  ;;  %p40_p7 = scmp.eq.s32.totalorder %s37_s29, 0 }
   0xd   : > { %p906_p8 = por %p56_p5, %p55_p3  ;;  %p171_p10 = scmp.eq.s32.totalorder %s608_s25, 1 }
   0xe   : > { %p910_p9 = por %p165_p6, %p49_p1  ;;  %p610_p12 = scmp.ge.s32.totalorder %s822_s23, 2 }
   0xf   : > { %s915_s7 = scalar_select %p40_p7, %s810_s20, %s42_s27  }
  0x10   : > { %p917_p11 = por %p171_p10, %p55_p3  ;;  %p652_p13 = scmp.lt.s32.totalorder %s822_s23, 2 }
  0x11   : > { %s203_s9 = sand.u32 1, %s810_s20   ;;  %s638_s11 = sshll.u32 %s818_s22, 6 }
  0x12   : > { %s611_s10 = sshll.u32 %s203_s9, 6  ;;  %s214_s14 = scalar_lea.hbm %s1090_s0, %s638_s11 }
  0x13   : > { %s207_s15 = scalar_lea.vmem [#allocation2], %s611_s10  ;;  %s215_s17 = sshll.u32 %s214_s14, 4  ;;  %s216_s17 = int_to_ptr.hbm [resolvable:$true] %s215_s17 }
  0x14   : > { %s217_s16 = sshll.u32 %s207_s15, 4  ;;  %p645_p0 = pnand %p652_p13, %p900_p4  ;;  %s218_s16 = int_to_ptr.vmem [resolvable:$true] %s217_s16 }
  0x15   : > { %p614_p1 = scmp.ge.s32.totalorder %s822_s23, 1  ;;  %s204_s24 = scalar_lea.sflag [#allocation3], %s203_s9 }
  0x16   : > { %s824_s25 = smov 256   ;;  %s825_s27 = smov 16  }
  0x17   : > { %647 = dma.hbm_to_vmem [thread:$0]  (!%p645_p0), %s216_s17, 1024, %s218_s16, %s204_s24, %s824_s25, %s824_s25, %s825_s27  }
  0x18   : > { %p225_p2 = scmp.lt.s32.totalorder %s822_s23, 3 }
  0x1a   : > { %p226_p3 = pnand %p614_p1, %p225_p2 }
  0x1b   : > { %s933_s29 = sand.u32 (!%p226_p3), 1, %s806_s19  }
  0x1c   : > { %229 = sbr.rel (%p226_p3) target bundleno = 371 (0x173), region = 40  ;;  %s615_s10 = sshll.u32 (!%p226_p3), %s933_s29, 6 }
  0x1d   : > { %s232_s11 = scalar_lea.sflag (!%p226_p3), [#allocation3], %s933_s29  ;;  %s235_s28 = scalar_lea.vmem (!%p226_p3), [#allocation2], %s615_s10 }
  0x21   : > { %793 = dma.done.wait (%p906_p8), %s232_s11, 1024  }
  0x22   : > { %795 = vsyncadd (%p906_p8), %s232_s11, 4294966272  ;;  %v826_v0 = vmov 0   ;;  %v943_v1 = vld [vmem:[%s235_s28 + $0x30] sm:$0xff]  ;;  %v945_v2 = vld [vmem:[%s235_s28 + $0x38] sm:$0xff]  ;;  %vm301_vm0 = vcmask 261120   ;;  %s1035_s16 = scalar_lea.vmem [#allocation5], %s615_s10 }
  0x23   : > { %708 = vset.pattern.permute.xlu1 %v826_v0  ;;  %707 = vset.pattern.permute.xlu0 %v826_v0  ;;  %v947_v3 = vld [vmem:[%s235_s28 + $0x20] sm:$0xff]  ;;  %v951_v4 = vld [vmem:[%s235_s28 + $0x28] sm:$0xff]  ;;  %v953_v5 = vld [vmem:[%s235_s28 + $0x10] sm:$0xff]  ;;  %s639_s10 = sshll.u32 %s814_s21, 6  ;;  %s517_s27 = sshll.u32 %s1035_s16, 4  ;;  %s518_s27 = int_to_ptr.vmem [resolvable:$true] %s517_s27 }
  0x24   : > { %709 = vset.pattern.permute.xlu2 %v826_v0  ;;  %326 = vmatpush.msra.mxu0 %v943_v1  ;;  %v955_v6 = vld [vmem:[%s235_s28 + $0x18] sm:$0xff]  ;;  %v278_v7 = vld [vmem:[%s1092_s2 + $0x8] sm:$0xff]  ;;  %v962_v8 = vld [vmem:[%s235_s28] sm:$0xff]  ;;  %s516_s25 = scalar_lea.hbm %s1095_s5, %s639_s10  ;;  %s503_s21 = scalar_lea.sflag [#allocation4], %s933_s29 }
  0x25   : > { %355 = vmatpush.msra.mxu1 %v945_v2  ;;  %v964_v9 = vld [vmem:[%s235_s28 + $0x8] sm:$0xff]  ;;  %288 = vperm.xlu1 %708, %v278_v7   ;;  %v280_v10 = vld [vmem:[%s1092_s2 + $0x18] sm:$0xff]  ;;  %v273_v11 = vld [vmem:[%s1091_s1] sm:$0xff]  ;;  %s519_s11 = sshll.u32 %s516_s25, 4  ;;  %s760_s13 = scalar_lea.hbm %s1095_s5, 128  ;;  %s520_s11 = int_to_ptr.hbm [resolvable:$true] %s519_s11 }
  0x26   : > { %327 = vmatpush.msra.mxu0 %v947_v3  ;;  %298 = vperm.xlu0 %707, %v280_v10   ;;  %v277_v12 = vld [vmem:[%s1092_s2] sm:$0xff]  ;;  %v279_v13 = vld [vmem:[%s1092_s2 + $0x10] sm:$0xff]  ;;  %v274_v14 = vld [vmem:[%s1091_s1 + $0x8] sm:$0xff]  ;;  %s754_s28 = sshra.s32 %s520_s11, 4  ;;  %s755_s28 = int_to_ptr.hbm [resolvable:$true] %s754_s28 }
  0x27   : > { %356 = vmatpush.msra.mxu1 %v951_v4  ;;  %v387_v15 = vld [vmem:[%s1094_s4 + $0x18] sm:$0xff]  ;;  %v386_v16 = vld [vmem:[%s1094_s4 + $0x10] sm:$0xff]  ;;  %v384_v39 = vld [vmem:[%s1094_s4] sm:$0xff]  ;;  %s756_s30 = scalar_lea.hbm %s755_s28, 64  ;;  %p761_p7 = scmp.lt.s32.totalorder %s755_s28, %s1095_s5 }
  0x28   : > { %328 = vmatpush.msra.mxu0 %v953_v5  ;;  %v275_v17 = vld [vmem:[%s1091_s1 + $0x10] sm:$0xff]  ;;  %v276_v18 = vld [vmem:[%s1091_s1 + $0x18] sm:$0xff]  ;;  %390 = vperm.xlu2 %709, %v384_v39   ;;  %v380_v48 = vld [vmem:[%s1093_s3] sm:$0xff]  ;;  %p757_p4 = scmp.ne.s32.totalorder %s755_s28, %s756_s30  ;;  %p762_p8 = scmp.lt.s32.totalorder %s760_s13, %s756_s30 }
  0x29   : > { %357 = vmatpush.msra.mxu1 %v955_v6  ;;  %v385_v49 = vld [vmem:[%s1094_s4 + $0x8] sm:$0xff]  ;;  %v382_v51 = vld [vmem:[%s1093_s3 + $0x10] sm:$0xff]  ;;  %v383_v52 = vld [vmem:[%s1093_s3 + $0x18] sm:$0xff] }
  0x2a   : > { %329 = vmatpush.msra.mxu0 %v962_v8  ;;  %v381_v50 = vld [vmem:[%s1093_s3 + $0x8] sm:$0xff]  ;;  %p758_p5 = pnand %p757_p4, %p910_p9  ;;  %p763_p10 = por %p762_p8, %p761_p7 }
  0x2b   : > { %358 = vmatpush.msra.mxu1 %v964_v9  ;;  %617 = vmatmul.msk.f32.vlgmr.msra.gmra.mxu0 %vm301_vm0, %v273_v11 }
  0x2c   : > { %621 = vmatmul.msk.f32.vlgmr.msra.gmra.mxu1 %vm301_vm0, %v273_v11  ;;  %p759_p6 = pneg %p758_p5 }
  0x2d   : > { %283 = vperm.xlu1 %708, %v277_v12  }
  0x2e   : > { %293 = vperm.xlu0 %707, %v279_v13   ;;  %p764_p13 = pnand %p763_p10, %p759_p6 }
  0x30   : > { %395 = vperm.xlu2 %709, %v385_v49  }
  0x33   : > { %618 = vmatmul.msk.f32.gmra.mxu0 %vm301_vm0, %v274_v14 }
  0x34   : > { %622 = vmatmul.msk.f32.gmra.mxu1 %vm301_vm0, %v274_v14 }
  0x35   : > { %405 = vperm.xlu1 %708, %v387_v15  }
  0x36   : > { %400 = vperm.xlu0 %707, %v386_v16  }
  0x3b   : > { %619 = vmatmul.msk.f32.gmra.mxu0 %vm301_vm0, %v275_v17 }
  0x3c   : > { %623 = vmatmul.msk.f32.gmra.mxu1 %vm301_vm0, %v275_v17 }
  0x43   : > { %620 = vmatmul.msk.f32.gmra.mxu0 %vm301_vm0, %v276_v18 }
  0x44   : > { %624 = vmatmul.msk.f32.gmra.mxu1 %vm301_vm0, %v276_v18 }
  0x82   : > { %v391_v53 = vpop.permute.xlu2 %390 }
  0x8a   : > { %v396_v62 = vpop.permute.xlu2 %395 }
  0x97   : > { %v289_v24 = vpop.permute.xlu1 %288 }
  0x98   : > { %v299_v23 = vpop.permute.xlu0 %298 }
  0x9f   : > { %v284_v34 = vpop.permute.xlu1 %283 }
  0xa0   : > { %v294_v27 = vpop.permute.xlu0 %293 }
  0xa8   : > { %v331_v19 = vpop.f32.mrf.mxu0  ;;  %v401_v13 = vpop.permute.xlu0 %400 }
  0xa9   : > { %v360_v20 = vpop.f32.mrf.mxu1  ;;  %v332_v40 = vadd.f32 %v331_v19, %v284_v34 }
  0xaa   : > { %v361_v41 = vadd.f32 %v360_v20, %v284_v34 }
  0xab   : > { %v372_v46 = vmax.f32 %v332_v40, 0.0 }
  0xac   : > { %v373_v47 = vmax.f32 %v361_v41, 0.0 }
  0xb0   : > { %v334_v21 = vpop.f32.mrf.mxu0 }
  0xb1   : > { %v363_v22 = vpop.f32.mrf.mxu1  ;;  %v335_v35 = vadd.f32 %v334_v21, %v289_v24 }
  0xb2   : > { %v364_v36 = vadd.f32 %v363_v22, %v289_v24 }
  0xb3   : > { %v374_v44 = vmax.f32 %v335_v35, 0.0 }
  0xb4   : > { %v375_v45 = vmax.f32 %v364_v36, 0.0 }
  0xb8   : > { %v337_v25 = vpop.f32.mrf.mxu0 }
  0xb9   : > { %v366_v26 = vpop.f32.mrf.mxu1  ;;  %v338_v30 = vadd.f32 %v337_v25, %v294_v27 }
  0xba   : > { %v367_v31 = vadd.f32 %v366_v26, %v294_v27 }
  0xbb   : > { %v376_v42 = vmax.f32 %v338_v30, 0.0 }
  0xbc   : > { %v377_v43 = vmax.f32 %v367_v31, 0.0 }
  0xc0   : > { %v340_v28 = vpop.f32.mrf.mxu0 }
  0xc1   : > { %v369_v29 = vpop.f32.mrf.mxu1  ;;  %v341_v32 = vadd.f32 %v340_v28, %v299_v23 }
  0xc2   : > { %v370_v33 = vadd.f32 %v369_v29, %v299_v23 }
  0xc3   : > { %v378_v37 = vmax.f32 %v341_v32, 0.0 }
  0xc4   : > { %v379_v38 = vmax.f32 %v370_v33, 0.0 }
  0xc5   : > { %432 = vmatpush.msra.mxu2 %v378_v37 }
  0xc6   : > { %461 = vmatpush.msra.mxu3 %v379_v38 }
  0xc7   : > { %433 = vmatpush.msra.mxu2 %v376_v42 }
  0xc8   : > { %462 = vmatpush.msra.mxu3 %v377_v43 }
  0xc9   : > { %434 = vmatpush.msra.mxu2 %v374_v44 }
  0xca   : > { %463 = vmatpush.msra.mxu3 %v375_v45 }
  0xcb   : > { %435 = vmatpush.msra.mxu2 %v372_v46 }
  0xcc   : > { %464 = vmatpush.msra.mxu3 %v373_v47  ;;  %625 = vmatmul.msk.f32.vlgmr.msra.gmra.mxu2 %vm301_vm0, %v380_v48 }
  0xcd   : > { %629 = vmatmul.msk.f32.vlgmr.msra.gmra.mxu3 %vm301_vm0, %v380_v48 }
  0xd4   : > { %626 = vmatmul.msk.f32.gmra.mxu2 %vm301_vm0, %v381_v50 }
  0xd5   : > { %630 = vmatmul.msk.f32.gmra.mxu3 %vm301_vm0, %v381_v50 }
  0xdc   : > { %627 = vmatmul.msk.f32.gmra.mxu2 %vm301_vm0, %v382_v51 }
  0xdd   : > { %631 = vmatmul.msk.f32.gmra.mxu3 %vm301_vm0, %v382_v51 }
  0xe4   : > { %628 = vmatmul.msk.f32.gmra.mxu2 %vm301_vm0, %v383_v52 }
  0xe5   : > { %632 = vmatmul.msk.f32.gmra.mxu3 %vm301_vm0, %v383_v52 }
 0x14f   : > { %v437_v54 = vpop.f32.mrf.mxu2 }
 0x150   : > { %v466_v55 = vpop.f32.mrf.mxu3  ;;  %v438_v56 = vadd.f32 %v437_v54, %v391_v53 }
 0x151   : > { %v467_v57 = vadd.f32 %v466_v55, %v391_v53 }
 0x152   : > { %v478_v58 = vadd.f32 %v438_v56, %v962_v8 }
 0x153   : > { %v479_v59 = vadd.f32 %v467_v57, %v964_v9 }
 0x154   : > { %v486_v60 = vmax.f32 %v478_v58, 0.0 }
 0x155   : > { %v487_v61 = vmax.f32 %v479_v59, 0.0 }
 0x156   : > { %494 = vst [vmem:[%s1035_s16] sm:$0xff] %v486_v60 }
 0x157   : > { %495 = vst [vmem:[%s1035_s16 + $0x8] sm:$0xff] %v487_v61  ;;  %v440_v63 = vpop.f32.mrf.mxu2 }
 0x158   : > { %v469_v0 = vpop.f32.mrf.mxu3  ;;  %v441_v7 = vadd.f32 %v440_v63, %v396_v62 }
 0x159   : > { %v470_v10 = vadd.f32 %v469_v0, %v396_v62 }
 0x15a   : > { %v480_v8 = vadd.f32 %v441_v7, %v953_v5 }
 0x15b   : > { %v481_v9 = vadd.f32 %v470_v10, %v955_v6  ;;  %v406_v6 = vpop.permute.xlu1 %405 }
 0x15c   : > { %v488_v11 = vmax.f32 %v480_v8, 0.0 }
 0x15d   : > { %v489_v12 = vmax.f32 %v481_v9, 0.0 }
 0x15e   : > { %496 = vst [vmem:[%s1035_s16 + $0x10] sm:$0xff] %v488_v11 }
 0x15f   : > { %497 = vst [vmem:[%s1035_s16 + $0x18] sm:$0xff] %v489_v12  ;;  %v443_v14 = vpop.f32.mrf.mxu2 }
 0x160   : > { %v472_v15 = vpop.f32.mrf.mxu3  ;;  %v444_v16 = vadd.f32 %v443_v14, %v401_v13 }
 0x161   : > { %v473_v17 = vadd.f32 %v472_v15, %v401_v13 }
 0x162   : > { %v482_v18 = vadd.f32 %v444_v16, %v947_v3 }
 0x163   : > { %v483_v19 = vadd.f32 %v473_v17, %v951_v4 }
 0x164   : > { %v490_v5 = vmax.f32 %v482_v18, 0.0 }
 0x165   : > { %v491_v20 = vmax.f32 %v483_v19, 0.0 }
 0x166   : > { %498 = vst [vmem:[%s1035_s16 + $0x20] sm:$0xff] %v490_v5 }
 0x167   : > { %499 = vst [vmem:[%s1035_s16 + $0x28] sm:$0xff] %v491_v20  ;;  %v446_v21 = vpop.f32.mrf.mxu2 }
 0x168   : > { %v475_v22 = vpop.f32.mrf.mxu3  ;;  %v447_v23 = vadd.f32 %v446_v21, %v406_v6 }
 0x169   : > { %v476_v3 = vadd.f32 %v475_v22, %v406_v6 }
 0x16a   : > { %v484_v4 = vadd.f32 %v447_v23, %v943_v1 }
 0x16b   : > { %v485_v24 = vadd.f32 %v476_v3, %v945_v2 }
 0x16c   : > { %v492_v25 = vmax.f32 %v484_v4, 0.0 }
 0x16d   : > { %v493_v26 = vmax.f32 %v485_v24, 0.0 }
 0x16e   : > { %500 = vst [vmem:[%s1035_s16 + $0x30] sm:$0xff] %v492_v25 }
 0x16f   : > { %501 = vst [vmem:[%s1035_s16 + $0x38] sm:$0xff] %v493_v26 }
 0x170   : > { %767 = shalt.err (!%p764_p13)
}
 0x171   : > { %s827_s29 = smov 256   ;;  %s828_s16 = smov 16  }
 0x172   : > { %642 = dma.vmem_to_hbm [thread:$0]  (%p910_p9), %s518_s27, 1024, %s520_s11, %s503_s21, %s827_s29, %s827_s29, %s828_s16  }
 0x173 PF: > { %s534_s10 = sand.u32 1, %s802_s18   ;;  %p649_p0 = pnand %p610_p12, %p917_p11 }
 0x174   : > { %s535_s17 = scalar_lea.sflag [#allocation4], %s534_s10 }
 0x175   : > { %p650_p1 = pneg %p649_p0 }
 0x177   : > { %797 = dma.done.wait (%p650_p1), %s535_s17, 1024  }
 0x178   : > { %799 = vsyncadd (%p650_p1), %s535_s17, 4294966272  ;;  %s21_s23 = sadd.s32 1, %s822_s23   ;;  %s1100_s18 = smov %s806_s19 }
 0x179   : > { %p18_p2 = scmp.ge.s32.totalorder %s21_s23, 4   ;;  %s1101_s19 = smov %s810_s20 }
 0x17a   : > { %s1102_s20 = smov %s915_s7  ;;  %s1103_s21 = smov %s818_s22 }
 0x17b   : > { %s1104_s22 = smov %s1106_s26  ;;  %20 = sbr.rel (!%p18_p2) target bundleno = 6 (0x6), region = 85 }
 0x180   :  { %541 = vsyncpa [#allocation3], 1 }
 0x181   :  { %543 = vsyncpa [#allocation3 + $0x1], 1 }
 0x182   :  { %544 = vsyncpa [#allocation4], 1 }
 0x183   :  { %546 = vsyncpa [#allocation4 + $0x1], 1 }

</bundles_post_ra>
